<compile_context>
chip_gen: v5e
topology: v5e:2x2
jax: 0.10.0
libtpu: 0.0.40
codegen_flags: <defaults>
</compile_context>

<pallas_src>
import functools

import jax
import jax.numpy as jnp
from jax.experimental import pallas as pl
from jax.experimental.pallas import tpu as pltpu


# ----------------------------- kernel ---------------------------------------


def _rope_kernel(cos_ref, sin_ref, q_ref, k_ref, qo_ref, ko_ref, *,
                 half, compute_dtype):
    # cos_ref / sin_ref : (TS, D) float32 table tiles (block index is constant
    #                     across the inner BH grid axis -> stays resident).
    # q/k/qo/ko refs    : (TBH, TS, D) in the caller's dtype.
    c = cos_ref[...].astype(compute_dtype)
    s = sin_ref[...].astype(compute_dtype)
    c1 = c[:, :half][None]          # (1, TS, half) — broadcasts over TBH
    c2 = c[:, half:][None]
    s1 = s[:, :half][None]
    s2 = s[:, half:][None]

    def apply(x_ref, o_ref):
        x = x_ref[...].astype(compute_dtype)     # (TBH, TS, D)
        x1 = x[:, :, :half]
        x2 = x[:, :, half:]
        # out = x * cos + rotate_half(x) * sin, written per half so no
        # cross-lane roll / concatenate is needed (lowers for any D).
        o_ref[:, :, :half] = (x1 * c1 - x2 * s1).astype(o_ref.dtype)
        o_ref[:, :, half:] = (x2 * c2 + x1 * s2).astype(o_ref.dtype)

    apply(q_ref, qo_ref)
    apply(k_ref, ko_ref)


# --------------------------- table creation ---------------------------------


def make_rope_tables(dim: int, max_seq_len: int):
    """Mirrors the PyTorch buffers (float32), shape [max_seq_len, dim]."""
    inv_freq = 1.0 / (10000.0 ** (jnp.arange(0, dim, 2, dtype=jnp.float32) / dim))
    t = jnp.arange(max_seq_len, dtype=jnp.float32)
    freqs = jnp.outer(t, inv_freq)                  # [max_seq_len, dim//2]
    emb = jnp.concatenate([freqs, freqs], axis=-1)  # [max_seq_len, dim]
    return jnp.cos(emb), jnp.sin(emb)


# --------------------------- tiling heuristics -------------------------------


def _vmem_capacity_bytes():
    try:
        return int(pltpu.get_tpu_info().vmem_capacity_bytes)
    except Exception:
        return 64 * 1024 * 1024      # conservative (v7x-sized) fallback


def _bf16_compute_supported():
    """v6e/v7x VPUs have bf16 ALUs; v5e and older (and CPU interpret) do not."""
    try:
        kind = jax.devices()[0].device_kind.lower()
    except Exception:
        return False
    if "tpu" not in kind:
        return False
    return not any(old in kind for old in ("v2", "v3", "v4", "v5"))


def _est_vmem_bytes(tbh, ts, d, itemsize):
    tile_in = tbh * ts * d * itemsize            # one q/k stream tile
    cs_tile = ts * d * 4                         # one f32 table tile
    pipeline = 2 * (4 * tile_in + 2 * cs_tile)   # double-buffered q,k,qo,ko,cos,sin
    temps = 8 * tbh * ts * d * 4                 # f32 elementwise temporaries headroom
    return pipeline + temps


def _largest_tile(total, cap, quantum):
    """Largest tile <= cap; prefer the full extent or a divisor of `total`
    that is a multiple of `quantum`; else fall back to a multiple of quantum
    (Pallas masks the trailing partial block)."""
    if total <= cap:
        return total
    best = 0
    t = quantum
    while t <= cap:
        if total % t == 0:
            best = t
        t += quantum
    return best if best else max(quantum, (cap // quantum) * quantum)


def _choose_tiles(BH, S, D, itemsize, vmem_budget,
                  min_steps=8, stream_tile_target=2 * 1024 * 1024):
    """Pick (TBH, TS) so that the grid has >= ~min_steps steps, each q/k tile
    is ~1-2 MiB, and the double-buffered footprint (+f32 temps) fits VMEM."""
    # --- rows along S ---
    max_ts = max(8, stream_tile_target // (D * itemsize))
    while max_ts > 8 and _est_vmem_bytes(1, min(max_ts, S), D, itemsize) > vmem_budget:
        max_ts = max(8, max_ts // 2)
    ts = _largest_tile(S, max_ts, 8)
    n_s = pl.cdiv(S, ts)

    # --- rows along the fused (B*H) axis ---
    tbh = 1
    target_steps = min(min_steps, n_s * BH)
    for cand in range(2, min(BH, 8) + 1):
        if BH % cand:
            continue                                    # keep even division of BH
        if n_s * (BH // cand) < target_steps:
            continue                                    # keep the pipeline / megacore fed
        if _est_vmem_bytes(cand, ts, D, itemsize) > vmem_budget:
            continue
        if cand * ts * D * itemsize > 2 * stream_tile_target:
            continue
        tbh = cand
    return tbh, ts


# ------------------------------- wrapper -------------------------------------


def rotary_positional_embedding(q, k, cos_cached, sin_cached, *, donate_qk=False):
    """q, k: [B, H, S, D].  Returns (q_rot, k_rot) with the same shape/dtype."""
    B, H, S, D = q.shape
    if k.shape != (B, H, S, D):
        raise ValueError(f"q/k shape mismatch: {q.shape} vs {k.shape}")
    if D % 2 != 0:
        raise ValueError(f"head_dim must be even, got {D}")
    max_seq_len, table_dim = cos_cached.shape
    if table_dim != D:
        raise ValueError(f"table dim {table_dim} != head_dim {D}")
    if S > max_seq_len:
        raise ValueError(f"seq_len {S} > max_seq_len {max_seq_len}")

    half = D // 2
    cos = cos_cached[:S, :].astype(jnp.float32)      # [S, D]
    sin = sin_cached[:S, :].astype(jnp.float32)      # [S, D]

    BH = B * H
    q2 = q.reshape(BH, S, D)
    k2 = k.reshape(BH, S, D)
    itemsize = max(q.dtype.itemsize, k.dtype.itemsize)

    # Generation-aware VMEM budget (64 MiB on v7x, 128 MiB on v5e/v6e).
    vmem_cap = _vmem_capacity_bytes()
    budget = min(int(vmem_cap * 0.45), 48 * 1024 * 1024)
    TBH, TS = _choose_tiles(BH, S, D, itemsize, budget)

    # S is the OUTER grid axis, BH the inner one: cos/sin stay resident
    # across the whole inner sweep.
    grid = (pl.cdiv(S, TS), pl.cdiv(BH, TBH))
    qk_spec = pl.BlockSpec((TBH, TS, D), lambda s, bh: (bh, s, 0))
    cs_spec = pl.BlockSpec((TS, D), lambda s, bh: (s, 0))

    if q.dtype == jnp.bfloat16 and _bf16_compute_supported():
        compute_dtype = jnp.bfloat16       # halves vreg/VMEM temp footprint on v6e/v7x
    else:
        compute_dtype = jnp.float32

    est = _est_vmem_bytes(TBH, TS, D, itemsize)
    vmem_limit = int(min(max(2 * est, 32 * 1024 * 1024), vmem_cap * 7 // 8))

    q_bytes = q2.size * q.dtype.itemsize
    k_bytes = k2.size * k.dtype.itemsize
    cost = pl.CostEstimate(
        flops=3 * (q2.size + k2.size),                       # 2 mul + 1 add per element
        transcendentals=0,
        bytes_accessed=2 * (q_bytes + k_bytes) + (cos.size + sin.size) * 4,
    )

    kernel = functools.partial(_rope_kernel, half=half, compute_dtype=compute_dtype)
    io_aliases = {2: 0, 3: 1} if donate_qk else {}

    q_out, k_out = pl.pallas_call(
        kernel,
        out_shape=(
            jax.ShapeDtypeStruct((BH, S, D), q.dtype),
            jax.ShapeDtypeStruct((BH, S, D), k.dtype),
        ),
        grid_spec=pltpu.PrefetchScalarGridSpec(
            num_scalar_prefetch=0,
            grid=grid,
            in_specs=[
                cs_spec,      # cos
                cs_spec,      # sin
                qk_spec,      # q
                qk_spec,      # k
            ],
            out_specs=[qk_spec, qk_spec],
        ),
        compiler_params=pltpu.CompilerParams(
            dimension_semantics=("parallel", "parallel"),
            vmem_limit_bytes=vmem_limit,
        ),
        cost_estimate=cost,
        input_output_aliases=io_aliases,
    )(cos, sin, q2, k2)

    return q_out.reshape(B, H, S, D), k_out.reshape(B, H, S, D)


# ------------------------------ reference ------------------------------------


def _rope_reference(q, k, cos_cached, sin_cached):
    S = q.shape[2]
    cos = cos_cached[None, None, :S, :].astype(jnp.float32)
    sin = sin_cached[None, None, :S, :].astype(jnp.float32)

    def rotate_half(x):
        half = x.shape[-1] // 2
        x1, x2 = x[..., :half], x[..., half:]
        return jnp.concatenate([-x2, x1], axis=-1)

    def apply(x):
        xf = x.astype(jnp.float32)
        return (xf * cos + rotate_half(xf) * sin).astype(x.dtype)

    return apply(q), apply(k)


if __name__ == "__main__":
    B, H, S, D = 2, 4, 8, 32
    max_seq_len = 64

    key = jax.random.PRNGKey(0)
    kq, kk = jax.random.split(key)
    q = jax.random.normal(kq, (B, H, S, D), dtype=jnp.float32)
    k = jax.random.normal(kk, (B, H, S, D), dtype=jnp.float32)

    cos_cached, sin_cached = make_rope_tables(D, max_seq_len)

    q_out, k_out = rotary_positional_embedding(q, k, cos_cached, sin_cached)
    q_out = jax.block_until_ready(q_out)
    k_out = jax.block_until_ready(k_out)

    q_ref, k_ref = _rope_reference(q, k, cos_cached, sin_cached)
    assert jnp.allclose(q_out, q_ref, atol=1e-5, rtol=1e-5)
    assert jnp.allclose(k_out, k_ref, atol=1e-5, rtol=1e-5)

    print("KERNEL_OK")
</pallas_src>

<mosaic_0001>
module attributes {stable_mosaic.version = 11 : i64} {
  func.func @_rope_kernel(%arg0: i32, %arg1: i32, %arg2: memref<8x32xf32, #tpu.memory_space<vmem>>, %arg3: memref<8x32xf32, #tpu.memory_space<vmem>>, %arg4: memref<1x8x32xf32, #tpu.memory_space<vmem>>, %arg5: memref<1x8x32xf32, #tpu.memory_space<vmem>>, %arg6: memref<1x8x32xf32, #tpu.memory_space<vmem>>, %arg7: memref<1x8x32xf32, #tpu.memory_space<vmem>>) attributes {dimension_semantics = [#tpu.dimension_semantics<parallel>, #tpu.dimension_semantics<parallel>], iteration_bounds = array<i64: 1, 8>, scalar_prefetch = 0 : i64, scratch_operands = 0 : i64, tpu.core_type = #tpu.core_type<tc>, window_params = [{transform_indices = @transform_0, window_bounds = array<i64: 8, 32>}, {transform_indices = @transform_1, window_bounds = array<i64: 8, 32>}, {transform_indices = @transform_2, window_bounds = array<i64: 1, 8, 32>}, {transform_indices = @transform_3, window_bounds = array<i64: 1, 8, 32>}, {transform_indices = @transform_4, window_bounds = array<i64: 1, 8, 32>}, {transform_indices = @transform_5, window_bounds = array<i64: 1, 8, 32>}]} {
    %c0 = arith.constant 0 : index
    %c0_0 = arith.constant 0 : index
    %0 = vector.load %arg2[%c0, %c0_0] : memref<8x32xf32, #tpu.memory_space<vmem>>, vector<8x32xf32>
    %c0_1 = arith.constant 0 : index
    %c0_2 = arith.constant 0 : index
    %1 = vector.load %arg3[%c0_1, %c0_2] : memref<8x32xf32, #tpu.memory_space<vmem>>, vector<8x32xf32>
    %2 = vector.extract_strided_slice %0 {offsets = [0, 0], sizes = [8, 16], strides = [1, 1]} : vector<8x32xf32> to vector<8x16xf32>
    %3 = vector.shape_cast %2 : vector<8x16xf32> to vector<1x8x16xf32>
    %4 = vector.extract_strided_slice %0 {offsets = [0, 16], sizes = [8, 16], strides = [1, 1]} : vector<8x32xf32> to vector<8x16xf32>
    %5 = vector.shape_cast %4 : vector<8x16xf32> to vector<1x8x16xf32>
    %6 = vector.extract_strided_slice %1 {offsets = [0, 0], sizes = [8, 16], strides = [1, 1]} : vector<8x32xf32> to vector<8x16xf32>
    %7 = vector.shape_cast %6 : vector<8x16xf32> to vector<1x8x16xf32>
    %8 = vector.extract_strided_slice %1 {offsets = [0, 16], sizes = [8, 16], strides = [1, 1]} : vector<8x32xf32> to vector<8x16xf32>
    %9 = vector.shape_cast %8 : vector<8x16xf32> to vector<1x8x16xf32>
    %c0_3 = arith.constant 0 : index
    %c0_4 = arith.constant 0 : index
    %c0_5 = arith.constant 0 : index
    %10 = vector.load %arg4[%c0_3, %c0_4, %c0_5] : memref<1x8x32xf32, #tpu.memory_space<vmem>>, vector<1x8x32xf32>
    %11 = vector.extract_strided_slice %10 {offsets = [0, 0, 0], sizes = [1, 8, 16], strides = [1, 1, 1]} : vector<1x8x32xf32> to vector<1x8x16xf32>
    %12 = vector.extract_strided_slice %10 {offsets = [0, 0, 16], sizes = [1, 8, 16], strides = [1, 1, 1]} : vector<1x8x32xf32> to vector<1x8x16xf32>
    %13 = arith.mulf %11, %3 : vector<1x8x16xf32>
    %14 = arith.mulf %12, %7 : vector<1x8x16xf32>
    %15 = arith.subf %13, %14 : vector<1x8x16xf32>
    %c0_6 = arith.constant 0 : index
    %c0_7 = arith.constant 0 : index
    %c0_8 = arith.constant 0 : index
    %16 = vector.load %arg6[%c0_6, %c0_7, %c0_8] : memref<1x8x32xf32, #tpu.memory_space<vmem>>, vector<1x8x16xf32>
    tpu.vector_store %arg6[%c0_6, %c0_7, %c0_8], %15 {strides = array<i32>} : memref<1x8x32xf32, #tpu.memory_space<vmem>>, vector<1x8x16xf32>,
    %17 = arith.mulf %12, %5 : vector<1x8x16xf32>
    %18 = arith.mulf %11, %9 : vector<1x8x16xf32>
    %19 = arith.addf %17, %18 : vector<1x8x16xf32>
    %c0_9 = arith.constant 0 : index
    %c0_10 = arith.constant 0 : index
    %c16 = arith.constant 16 : index
    %20 = vector.load %arg6[%c0_9, %c0_10, %c16] : memref<1x8x32xf32, #tpu.memory_space<vmem>>, vector<1x8x16xf32>
    tpu.vector_store %arg6[%c0_9, %c0_10, %c16], %19 {strides = array<i32>} : memref<1x8x32xf32, #tpu.memory_space<vmem>>, vector<1x8x16xf32>,
    %c0_11 = arith.constant 0 : index
    %c0_12 = arith.constant 0 : index
    %c0_13 = arith.constant 0 : index
    %21 = vector.load %arg5[%c0_11, %c0_12, %c0_13] : memref<1x8x32xf32, #tpu.memory_space<vmem>>, vector<1x8x32xf32>
    %22 = vector.extract_strided_slice %21 {offsets = [0, 0, 0], sizes = [1, 8, 16], strides = [1, 1, 1]} : vector<1x8x32xf32> to vector<1x8x16xf32>
    %23 = vector.extract_strided_slice %21 {offsets = [0, 0, 16], sizes = [1, 8, 16], strides = [1, 1, 1]} : vector<1x8x32xf32> to vector<1x8x16xf32>
    %24 = arith.mulf %22, %3 : vector<1x8x16xf32>
    %25 = arith.mulf %23, %7 : vector<1x8x16xf32>
    %26 = arith.subf %24, %25 : vector<1x8x16xf32>
    %c0_14 = arith.constant 0 : index
    %c0_15 = arith.constant 0 : index
    %c0_16 = arith.constant 0 : index
    %27 = vector.load %arg7[%c0_14, %c0_15, %c0_16] : memref<1x8x32xf32, #tpu.memory_space<vmem>>, vector<1x8x16xf32>
    tpu.vector_store %arg7[%c0_14, %c0_15, %c0_16], %26 {strides = array<i32>} : memref<1x8x32xf32, #tpu.memory_space<vmem>>, vector<1x8x16xf32>,
    %28 = arith.mulf %23, %5 : vector<1x8x16xf32>
    %29 = arith.mulf %22, %9 : vector<1x8x16xf32>
    %30 = arith.addf %28, %29 : vector<1x8x16xf32>
    %c0_17 = arith.constant 0 : index
    %c0_18 = arith.constant 0 : index
    %c16_19 = arith.constant 16 : index
    %31 = vector.load %arg7[%c0_17, %c0_18, %c16_19] : memref<1x8x32xf32, #tpu.memory_space<vmem>>, vector<1x8x16xf32>
    tpu.vector_store %arg7[%c0_17, %c0_18, %c16_19], %30 {strides = array<i32>} : memref<1x8x32xf32, #tpu.memory_space<vmem>>, vector<1x8x16xf32>,
    return
  }
  func.func @transform_0(%arg0: i32, %arg1: i32) -> (i32, i32) {
    %c0_i32 = arith.constant 0 : i32
    %c0_i32_0 = arith.constant 0 : i32
    return %arg0, %c0_i32 : i32, i32
  }
  func.func @transform_1(%arg0: i32, %arg1: i32) -> (i32, i32) {
    %c0_i32 = arith.constant 0 : i32
    %c0_i32_0 = arith.constant 0 : i32
    return %arg0, %c0_i32 : i32, i32
  }
  func.func @transform_2(%arg0: i32, %arg1: i32) -> (i32, i32, i32) {
    %c0_i32 = arith.constant 0 : i32
    %c0_i32_0 = arith.constant 0 : i32
    return %arg1, %arg0, %c0_i32 : i32, i32, i32
  }
  func.func @transform_3(%arg0: i32, %arg1: i32) -> (i32, i32, i32) {
    %c0_i32 = arith.constant 0 : i32
    %c0_i32_0 = arith.constant 0 : i32
    return %arg1, %arg0, %c0_i32 : i32, i32, i32
  }
  func.func @transform_4(%arg0: i32, %arg1: i32) -> (i32, i32, i32) {
    %c0_i32 = arith.constant 0 : i32
    %c0_i32_0 = arith.constant 0 : i32
    return %arg1, %arg0, %c0_i32 : i32, i32, i32
  }
  func.func @transform_5(%arg0: i32, %arg1: i32) -> (i32, i32, i32) {
    %c0_i32 = arith.constant 0 : i32
    %c0_i32_0 = arith.constant 0 : i32
    return %arg1, %arg0, %c0_i32 : i32, i32, i32
  }
}

</mosaic_0001>

<bundles_post_ra>
// kernel: tpu_custom_call.1
= control target key start
LH: loop header
LB: loop body
LE: loop exit
PB: predicated region body
PF: predicated region fallthrough
CT: control target
= control target key end

     0   :  { %s1182_s0 = inlined_call_operand.hbm [shape: f32[8,32], index: 0, kind: input, shape index: {}]   ;;  %s1183_s1 = inlined_call_operand.hbm [shape: f32[8,32], index: 1, kind: input, shape index: {}]   ;;  %s1184_s2 = inlined_call_operand.hbm [shape: f32[8,8,32], index: 2, kind: input, shape index: {}]   ;;  %s1185_s3 = inlined_call_operand.hbm [shape: f32[8,8,32], index: 3, kind: input, shape index: {}]   ;;  %s1186_s4 = inlined_call_operand.hbm [shape: f32[8,8,32], index: 4, kind: output, shape index: {0}]   ;;  %s1187_s5 = inlined_call_operand.hbm [shape: f32[8,8,32], index: 5, kind: output, shape index: {1}]  }
   0x1   :  { %1192 = sst [smem:[#allocation22_spill]] %s1182_s0 }
   0x2   :  { %1193 = sst [smem:[#allocation23_spill]] %s1184_s2 }
   0x3   :  { %11 = vsyncpa [#allocation3], 0 }
   0x4   :  { %12 = vsyncpa [#allocation6], 0 }
   0x5   :  { %13 = vsyncpa [#allocation4], 0 }
   0x6   :  { %15 = vsyncpa [#allocation4 + $0x1], 0 }
   0x7   :  { %16 = vsyncpa [#allocation11], 0 }
   0x8   :  { %18 = vsyncpa [#allocation11 + $0x1], 0  ;;  %s986_s18 = smov 0   ;;  %s988_s19 = smov 0  }
   0x9   :  { %s990_s20 = smov 0   ;;  %s992_s21 = smov 0  }
   0xa   :  { %s994_s22 = smov 0   ;;  %s996_s23 = smov 0  }
   0xb LB: > { %1194 = sst [smem:[#allocation17_spill]] %s938_s20  ;;  %s1017_s24 = sadd.s32 4294967295, %s950_s23   ;;  %s950_s23 = sphi %s996_s23, %s24_s23   ;;  %s946_s22 = sphi %s994_s22, %s1212_s22   ;;  %s942_s21 = sphi %s992_s21, %s1211_s21   ;;  %s938_s20 = sphi %s990_s20, %s1210_s20   ;;  %s934_s19 = sphi %s988_s19, %s1214_s19   ;;  %s930_s18 = sphi %s986_s18, %s1213_s18  }
   0xc   : > { %1195 = sst [smem:[#allocation18_spill]] %s946_s22  ;;  %s591_s25 = sadd.s32 4294967294, %s950_s23  }
   0xd   : > { %p110_p0 = scmp.ne.s32.totalorder %s934_s19, %s930_s18  ;;  %p111_p1 = scmp.eq.s32.totalorder %s1017_s24, 0 }
   0xe   : > { %p164_p2 = scmp.eq.s32.totalorder %s1017_s24, 7  ;;  %p170_p3 = scmp.eq.s32.totalorder %s591_s25, 7 }
   0xf   : > { %p1026_p4 = por %p111_p1, %p110_p0  ;;  %p592_p5 = scmp.ge.s32.totalorder %s950_s23, 1 }
  0x10   : > { %p1031_p6 = por %p170_p3, %p110_p0  ;;  %p205_p7 = scmp.lt.s32.totalorder %s950_s23, 9 }
  0x11   : > { %s1199_s0 = sld [smem:[#allocation22_spill]]  ;;  %s952_s7 = smov [#allocation2]  }
  0x12   : > { %s1197_s27 = scalar_select %p1031_p6, 1, 0 }
  0x13   : > { %p1039_p8 = pnand %p592_p5, %p205_p7  ;;  %s221_s8 = sshll.u32 %s952_s7, 4  ;;  %s222_s8 = int_to_ptr.vmem [resolvable:$true] %s221_s8 }
  0x14   : > { %1198 = sst [smem:[#allocation19_spill]] %s1197_s27  ;;  %s33_s10 = sadd.s32 1, %s946_s22 }
  0x15   : > { %p629_p9 = pneg %p1039_p8  ;;  %p34_p11 = scmp.ge.s32.totalorder %s33_s10, 8 }
  0x16   : > { %s97_s11 = sadd.s32 1, %s938_s20  ;;  %p104_p12 = scmp.ne.s32.totalorder %s938_s20, %s934_s19 }
  0x17   : > { %s219_s30 = sshll.u32 %s1199_s0, 4  ;;  %p1047_p10 = pnand %p629_p9, %p111_p1  ;;  %s220_s30 = int_to_ptr.hbm [resolvable:$true] %s219_s30 }
  0x18   : > { %p105_p13 = scmp.eq.s32.totalorder %s950_s23, 0  ;;  %s1216_s10 = smov (%p34_p11, %s33_s10), 0 }
  0x19   : > { %632 = dma.hbm_to_vmem [thread:$0]  (!%p1047_p10), %s220_s30, 128, %s222_s8, [#allocation3]  }
  0x1a   : > { %1202 = sst [smem:[#allocation20_spill]] %s1216_s10  ;;  %p1060_p0 = por %p105_p13, %p104_p12 }
  0x1b   : > { %p1066_p3 = por %p164_p2, %p104_p12  ;;  %s92_s14 = ssub.s32 %s946_s22, %s1216_s10 }
  0x1c   : > { %p652_p5 = scmp.lt.s32.totalorder %s950_s23, 8  ;;  %p95_p7 = scmp.eq.s32.totalorder %s92_s14, 0 }
  0x1d   : > { %s246_s15 = sand.u32 1, %s950_s23   ;;  %s248_s16 = sand.u32 1, %s938_s20  }
  0x1e   : > { %s1076_s17 = scalar_select %p95_p7, %s938_s20, %s97_s11  }
  0x1f   : > { %s596_s25 = sshll.u32 %s248_s16, 3  ;;  %s597_s28 = sshll.u32 %s946_s22, 3 }
  0x20   : > { %1205 = sst [smem:[#allocation21_spill]] %s1076_s17  ;;  %s250_s0 = scalar_lea.vmem [#allocation7], %s596_s25 }
  0x21   : > { %s1206_s2 = sld [smem:[#allocation23_spill]]  ;;  %s259_s27 = sshll.u32 %s250_s0, 4  ;;  %s260_s27 = int_to_ptr.vmem [resolvable:$true] %s259_s27 }
  0x22   : > { %p1086_p2 = pnand %p652_p5, %p1060_p0  ;;  %s233_s16 = sshll.u32 %s1183_s1, 4  ;;  %s234_s16 = int_to_ptr.hbm [resolvable:$true] %s233_s16 }
  0x23   : > { %s953_s29 = smov [#allocation5]   ;;  %s270_s22 = scalar_lea.vmem [#allocation8], %s596_s25 }
  0x24   : > { %s235_s30 = sshll.u32 %s953_s29, 4  ;;  %s279_s17 = sshll.u32 %s270_s22, 4  ;;  %s236_s30 = int_to_ptr.vmem [resolvable:$true] %s235_s30  ;;  %s280_s17 = int_to_ptr.vmem [resolvable:$true] %s279_s17 }
  0x25   : > { %635 = dma.hbm_to_vmem [thread:$0]  (!%p1047_p10), %s234_s16, 128, %s236_s30, [#allocation6]  }
  0x27   : > { %s255_s7 = scalar_lea.hbm %s1206_s2, %s597_s28  ;;  %s275_s2 = scalar_lea.hbm %s1185_s3, %s597_s28 }
  0x28   : > { %s257_s8 = sshll.u32 %s255_s7, 4  ;;  %s247_s7 = scalar_lea.sflag [#allocation3], %s246_s15  ;;  %s258_s8 = int_to_ptr.hbm [resolvable:$true] %s257_s8 }
  0x29   : > { %639 = dma.hbm_to_vmem [thread:$0]  (!%p1086_p2), %s258_s8, 128, %s260_s27, %s247_s7  }
  0x2a   : > { %s277_s20 = sshll.u32 %s275_s2, 4  ;;  %288 = sbr.rel (%p1039_p8) target bundleno = 307 (0x133), region = 36  ;;  %s278_s20 = int_to_ptr.hbm [resolvable:$true] %s277_s20 }
  0x2b   : > { %642 = dma.hbm_to_vmem [thread:$0]  (!%p1086_p2), %s278_s20, 128, %s280_s17, %s247_s7  }
  0x2f   : > { %909 = dma.done.wait (%p111_p1), [#allocation3], 128  }
  0x30   : > { %911 = vsyncadd (%p111_p1), [#allocation3], 4294967168 }
  0x31   : > { %913 = dma.done.wait (%p111_p1), [#allocation6], 128  }
  0x32   : > { %915 = vsyncadd (%p111_p1), [#allocation6], 4294967168  ;;  %s300_s2 = sand.u32 1, %s1017_s24   ;;  %s1114_s20 = sand.u32 1, %s934_s19  }
  0x33   : > { %s1117_s22 = sshll.u32 %s1114_s20, 3  ;;  %s301_s27 = scalar_lea.sflag [#allocation3], %s300_s2 }
  0x34   : > { %s304_s6 = scalar_lea.vmem [#allocation7], %s1117_s22 }
  0x35   : > { %917 = dma.done.wait (%p1026_p4), %s301_s27, 256  }
  0x36   : > { %919 = vsyncadd (%p1026_p4), %s301_s27, 4294967040  ;;  %v353_v0 = vld [vmem:[#allocation5] sm:$0xff]  ;;  %s954_s9 = smov 16   ;;  %s955_s10 = smov 112   ;;  %v354_v1 = vld [vmem:[%s304_s6] sm:$0xff]  ;;  %vm366_vm0 = vcmask 130048  }
  0x37   : > { %357 = vrot.lane.b32.xlu0 %v353_v0, %s954_s9  ;;  %s314_s24 = scalar_lea.vmem [#allocation8], %s1117_s22  ;;  %v352_v9 = vld [vmem:[#allocation2] sm:$0xff]  ;;  %s609_s26 = sshll.u32 %s942_s21, 3  ;;  %vm377_vm1 = vcmask 261248  }
  0x38   : > { %v379_v4 = vld [vmem:[%s314_s24] sm:$0xff]  ;;  %v355_v10 = vmul.f32 %v354_v1, %v352_v9  ;;  %s412_s25 = scalar_lea.hbm %s1186_s4, %s609_s26  ;;  %s344_s28 = scalar_lea.vmem [#allocation9], %s1117_s22 }
  0x39   : > { %s414_s8 = sshll.u32 %s344_s28, 4  ;;  %s416_s14 = sshll.u32 %s412_s25, 4  ;;  %s415_s8 = int_to_ptr.vmem [resolvable:$true] %s414_s8  ;;  %s417_s14 = int_to_ptr.hbm [resolvable:$true] %s416_s14 }
  0x3a   : > { %s427_s16 = scalar_lea.hbm %s1187_s5, %s609_s26  ;;  %s396_s29 = scalar_lea.sflag [#allocation4], %s1114_s20 }
  0x3b   : > { %s842_s30 = sshra.s32 %s417_s14, 4  ;;  %s848_s2 = scalar_lea.hbm %s1186_s4, 64  ;;  %s843_s30 = int_to_ptr.hbm [resolvable:$true] %s842_s30 }
  0x3c   : > { %s844_s7 = scalar_lea.hbm %s843_s30, 8  ;;  %p849_p9 = scmp.lt.s32.totalorder %s843_s30, %s1186_s4 }
  0x3d   : > { %p845_p1 = scmp.ne.s32.totalorder %s843_s30, %s844_s7  ;;  %p850_p10 = scmp.lt.s32.totalorder %s848_s2, %s844_s7 }
  0x3f   : > { %368 = vrot.lane.b32.xlu0 %v353_v0, %s955_s10  ;;  %p846_p4 = pnand %p845_p1, %p1066_p3  ;;  %p851_p11 = por %p850_p10, %p849_p9 }
  0x41   : > { %p847_p8 = pneg %p846_p4 }
  0x43   : > { %p852_p12 = pnand %p851_p11, %p847_p8 }
  0xa9   : > { %v358_v2 = vpop.permute.xlu0 %357 }
  0xaa   : > { %v360_v3 = vmul.f32 %v358_v2, %v354_v1  ;;  %v381_v6 = vmul.f32 %v379_v4, %v358_v2 }
  0xac   : > { %362 = vrot.lane.b32.xlu1 %v360_v3, %s955_s10 }
  0xb1   : > { %v369_v5 = vpop.permute.xlu0 %368 }
  0xb2   : > { %v371_v7 = vmul.f32 %v369_v5, %v354_v1  ;;  %v388_v8 = vmul.f32 %v379_v4, %v369_v5 }
  0xb4   : > { %383 = vrot.lane.b32.xlu1 %v381_v6, %s955_s10  ;;  %373 = vrot.lane.b32.xlu2 %v371_v7, %s954_s9 }
  0xbc   : > { %390 = vrot.lane.b32.xlu2 %v388_v8, %s954_s9 }
 0x10e   : > { %v374_v11 = vpop.permute.xlu2 %373 }
 0x10f   : > { %v376_v12 = vadd.f32 %v374_v11, %v355_v10 }
 0x11e   : > { %v363_v13 = vpop.permute.xlu1 %362 }
 0x11f   : > { %v365_v14 = vsub.f32 %v355_v10, %v363_v13 }
 0x121   : > { %367 = vst.msk [vmem:[%s344_s28] sm:$0xff] %vm366_vm0, %v365_v14 }
 0x122   : > { %378 = vst.msk [vmem:[%s344_s28] sm:$0xff] %vm377_vm1, %v376_v12 }
 0x123   : > { %855 = shalt.err (!%p852_p12)
}
 0x124   : > { %625 = dma.vmem_to_hbm [thread:$0]  (%p1066_p3), %s415_s8, 128, %s417_s14, %s396_s29   ;;  %v380_v15 = vmul.f32 %v379_v4, %v352_v9  ;;  %v391_v16 = vpop.permute.xlu2 %390 }
 0x125   : > { %s351_s9 = scalar_lea.vmem [#allocation10], %s1117_s22  ;;  %s431_s24 = sshll.u32 %s427_s16, 4  ;;  %s432_s24 = int_to_ptr.hbm [resolvable:$true] %s431_s24 }
 0x126   : > { %s429_s10 = sshll.u32 %s351_s9, 4  ;;  %v384_v17 = vpop.permute.xlu1 %383  ;;  %v393_v19 = vadd.f32 %v391_v16, %v380_v15  ;;  %s401_s26 = scalar_lea.sflag [#allocation11], %s1114_s20  ;;  %s430_s10 = int_to_ptr.vmem [resolvable:$true] %s429_s10 }
 0x127   : > { %v386_v18 = vsub.f32 %v380_v15, %v384_v17  ;;  %s870_s15 = sshra.s32 %s432_s24, 4  ;;  %s876_s28 = scalar_lea.hbm %s1187_s5, 64  ;;  %s871_s15 = int_to_ptr.hbm [resolvable:$true] %s870_s15 }
 0x128   : > { %s872_s17 = scalar_lea.hbm %s871_s15, 8  ;;  %p877_p7 = scmp.lt.s32.totalorder %s871_s15, %s1187_s5 }
 0x129   : > { %387 = vst.msk [vmem:[%s351_s9] sm:$0xff] %vm366_vm0, %v386_v18  ;;  %p873_p13 = scmp.ne.s32.totalorder %s871_s15, %s872_s17  ;;  %p878_p2 = scmp.lt.s32.totalorder %s876_s28, %s872_s17 }
 0x12a   : > { %394 = vst.msk [vmem:[%s351_s9] sm:$0xff] %vm377_vm1, %v393_v19 }
 0x12b   : > { %p874_p0 = pnand %p873_p13, %p1066_p3  ;;  %p879_p1 = por %p878_p2, %p877_p7 }
 0x12d   : > { %p875_p5 = pneg %p874_p0 }
 0x12f   : > { %p880_p4 = pnand %p879_p1, %p875_p5 }
 0x131   : > { %883 = shalt.err (!%p880_p4)
}
 0x132   : > { %626 = dma.vmem_to_hbm [thread:$0]  (%p1066_p3), %s430_s10, 128, %s432_s24, %s401_s26  }
 0x133 PF: > { %p655_p8 = scmp.ge.s32.totalorder %s950_s23, 2  ;;  %s443_s21 = sand.u32 1, %s930_s18  }
 0x134   : > { %s444_s11 = scalar_lea.sflag [#allocation4], %s443_s21 }
 0x135   : > { %p644_p9 = pnand %p655_p8, %p1031_p6 }
 0x137   : > { %p645_p10 = pneg %p644_p9 }
 0x139   : > { %921 = dma.done.wait (%p645_p10), %s444_s11, 128  }
 0x13a   : > { %923 = vsyncadd (%p645_p10), %s444_s11, 4294967168  ;;  %s454_s16 = scalar_lea.sflag [#allocation11], %s443_s21 }
 0x13b   : > { %925 = dma.done.wait (%p645_p10), %s454_s16, 128  }
 0x13c   : > { %927 = vsyncadd (%p645_p10), %s454_s16, 4294967168  ;;  %s24_s23 = sadd.s32 1, %s950_s23   ;;  %s1209_s13 = sld [smem:[#allocation17_spill]] }
 0x13d   : > { %p21_p11 = scmp.ge.s32.totalorder %s24_s23, 10   ;;  %s1210_s20 = sld [smem:[#allocation21_spill]] }
 0x13e   : > { %s1211_s21 = sld [smem:[#allocation18_spill]]  ;;  %s1213_s18 = smov %s934_s19 }
 0x13f   : > { %s1212_s22 = sld [smem:[#allocation20_spill]]  ;;  %23 = sbr.rel (!%p21_p11) target bundleno = 11 (0xb), region = 118 }
 0x142   : > { %s1214_s19 = smov %s1209_s13 }
 0x144   :  { %460 = vsyncpa [#allocation3], 1 }
 0x145   :  { %462 = vsyncpa [#allocation3 + $0x1], 1 }
 0x146   :  { %463 = vsyncpa [#allocation6], 1 }
 0x147   :  { %464 = vsyncpa [#allocation4], 1 }
 0x148   :  { %466 = vsyncpa [#allocation4 + $0x1], 1 }
 0x149   :  { %467 = vsyncpa [#allocation11], 1 }
 0x14a   :  { %469 = vsyncpa [#allocation11 + $0x1], 1 }

</bundles_post_ra>
